<compile_context>
chip_gen: v7x
topology: tpu7x:2x2x1
jax: 0.10.0
libtpu: 0.0.40
codegen_flags: <defaults>
</compile_context>

<pallas_src>
import functools

import jax
import jax.numpy as jnp
from jax import lax
from jax.experimental import pallas as pl
from jax.experimental.pallas import tpu as pltpu

EPS = 1e-12                 # F.normalize default eps
_LANE = 128                 # TPU lane width
_SUBLANE = 8                # TPU sublane width
_MIB = 1024 * 1024


def _round_up(x, m):
    return ((x + m - 1) // m) * m


def _pad_cols(w, target):
    pad = target - w.shape[-1]
    return jnp.pad(w, ((0, 0), (0, pad))) if pad > 0 else w


def _tpu_vmem_capacity():
    # Trace-time hardware query; fall back to the smallest (v7x) budget.
    try:
        return int(pltpu.get_tpu_info().vmem_capacity_bytes)
    except Exception:
        return 64 * _MIB


def _budgets():
    """Per-generation (scoped VMEM limit, image-stream bytes, token bytes)."""
    cap = _tpu_vmem_capacity()
    vmem_limit = (cap * 3) // 4          # ~48 MiB on v7x, ~96 MiB on v5e/v6e
    if cap <= 64 * _MIB:                 # v7x: 64 MiB physical VMEM
        stream_budget = 8 * _MIB         # per input buffer (double-buffered)
        tok_budget = 8 * _MIB
    else:                                # v5e / v6e: 128 MiB physical VMEM
        stream_budget = 16 * _MIB
        tok_budget = 16 * _MIB
    return vmem_limit, stream_budget, tok_budget


# ----------------------------------------------------------------------------
# Pallas kernels
# ----------------------------------------------------------------------------
def _spatial_sum_kernel(img_ref, out_ref, *, s_total, ts, tiles_per_split,
                        needs_mask):
    # img_ref: (R, ts)  f32  block of the (b*c, S) flattened video
    # out_ref: (R, 1)   f32  per-split running row sums (resident over the
    #                        "arbitrary" S axis; split axis is "parallel")
    k = pl.program_id(1)

    @pl.when(k == 0)
    def _init():
        out_ref[...] = jnp.zeros_like(out_ref)

    x = img_ref[...]
    if needs_mask:
        # Mask the ragged S tail / clamped over-run tiles (Pallas does not
        # zero-fill out-of-bounds parts of partial blocks).
        p = pl.program_id(0)
        start = (p * tiles_per_split + k) * ts
        col = start + lax.broadcasted_iota(jnp.int32, x.shape, 1)
        x = jnp.where(col < s_total, x, 0.0)
    # Lane reduce: VPU adds across 128-lane blocks + one XLU finish; overlaps
    # with the DMA stream, which is the bottleneck.
    out_ref[...] += jnp.sum(x, axis=-1, keepdims=True)


def _vision_head_kernel(pooled_ref, w_enc_ref, w_proj_ref, out_ref):
    # pooled_ref: (b, c)     f32   mean-pooled video
    # w_enc_ref:  (c, Vw)    f32   stand-in vision encoder
    # w_proj_ref: (Vw, Ep)   f32   image_projection, zero-padded to lane width
    # out_ref:    (b, Ep)    f32   L2-normalized image embedding
    feat = jnp.dot(pooled_ref[...], w_enc_ref[...],
                   preferred_element_type=jnp.float32)
    emb = jnp.dot(feat, w_proj_ref[...], preferred_element_type=jnp.float32)
    ss = jnp.sum(emb * emb, axis=-1, keepdims=True)
    # F.normalize: x / max(||x||, eps) == x * rsqrt(max(||x||^2, eps^2))
    out_ref[...] = emb * lax.rsqrt(jnp.maximum(ss, EPS * EPS))


def _text_kernel(tok_ref, mask_ref, w_enc_ref, w_proj_ref, out_ref):
    # tok_ref:    (TB, seq, Tw) bf16  token embeddings (gather done in glue)
    # mask_ref:   (TB, seq)     f32   attention mask
    # w_enc_ref:  (Tw, Tw)      f32   stand-in text encoder (resident, 1-buf)
    # w_proj_ref: (Tw, Ep)      f32   text_projection (resident, 1-buf)
    # out_ref:    (TB, Ep)      f32   L2-normalized text embedding
    m = mask_ref[...]
    msum = jnp.maximum(jnp.sum(m, axis=-1, keepdims=True), 1.0)       # (TB, 1)
    wgt = m / msum                                                    # (TB, seq)
    pooled = jnp.sum(tok_ref[...].astype(jnp.float32) * wgt[:, :, None],
                     axis=1)                                          # (TB, Tw)
    cls = jnp.tanh(jnp.dot(pooled, w_enc_ref[...],
                           preferred_element_type=jnp.float32))       # (TB, Tw)
    x = jnp.dot(cls, w_proj_ref[...], preferred_element_type=jnp.float32)
    ss = jnp.sum(x * x, axis=-1, keepdims=True)
    out_ref[...] = x * lax.rsqrt(jnp.maximum(ss, EPS * EPS))


# ----------------------------------------------------------------------------
# Wrappers
# ----------------------------------------------------------------------------
def encode_image(image, w_vis_enc, image_projection, *, s_tile=None):
    b, c, t, h, w = image.shape
    s = t * h * w
    r = b * c
    e = image_projection.shape[1]
    e_pad = _round_up(e, _LANE)
    vmem_limit, stream_budget, _ = _budgets()

    # (b,c,t,h,w) -> (b*c, S): free contiguous reshape.  The f32 tensor is fed
    # straight into the kernel (no cast / pad copies in HBM).
    img2d = image.reshape(r, s)

    # Spatial tile: biggest multiple of 128 lanes whose f32 block fits the
    # per-generation stream budget (the pipeline double-buffers it).
    row_bytes = r * 4
    if s_tile is not None:
        ts = _round_up(min(int(s_tile), s), _LANE)
    else:
        ts = max(_LANE, (stream_budget // max(row_bytes, 1)) // _LANE * _LANE)
    ts = min(ts, _round_up(s, _LANE))
    if ts >= s:
        ts = s                        # single full-width tile (full-dim block)
    assert ts == s or ts % _LANE == 0
    nst = pl.cdiv(s, ts)

    # Split the S stream over a leading "parallel" axis so v7x's two
    # TensorCores each take half of the dominant HBM stream.
    n_split = 2 if nst >= 2 else 1
    nps = pl.cdiv(nst, n_split)
    needs_mask = (s % ts != 0) or (n_split * nps != nst)

    kernel = functools.partial(_spatial_sum_kernel, s_total=s, ts=ts,
                               tiles_per_split=nps, needs_mask=needs_mask)

    sums = pl.pallas_call(
        kernel,
        out_shape=jax.ShapeDtypeStruct((n_split, r, 1), jnp.float32),
        grid=(n_split, nps),
        in_specs=[
            # Clamp over-run tile indices into range; their contribution is
            # masked to zero inside the kernel.
            pl.BlockSpec((r, ts),
                         lambda p, k: (0, jnp.minimum(p * nps + k, nst - 1))),
        ],
        out_specs=pl.BlockSpec((None, r, 1), lambda p, k: (p, 0, 0)),
        compiler_params=pltpu.CompilerParams(
            dimension_semantics=("parallel", "arbitrary"),
            vmem_limit_bytes=vmem_limit,
        ),
    )(img2d)

    # Tiny (b, c) combine/mean in plain jnp; the module's own compute
    # (projection matmul + normalize) runs in the Pallas head kernel.
    pooled = (sums.sum(axis=0)[:, 0].reshape(b, c) * (1.0 / float(s)))

    w_enc = w_vis_enc.astype(jnp.float32)
    w_proj = _pad_cols(image_projection, e_pad).astype(jnp.float32)
    out = pl.pallas_call(
        _vision_head_kernel,
        out_shape=jax.ShapeDtypeStruct((b, e_pad), jnp.float32),
    )(pooled, w_enc, w_proj)
    return out[:, :e]


def encode_text(text, mask, embed_table, w_txt_enc, text_projection):
    # text: (b, 1, seq) int32 ; mask: (b, seq)
    text = jnp.squeeze(text, axis=1)                        # (b, seq)
    # TODO(synk): the text backbone is externally injected in the PyTorch
    # module; the embedding gather here is part of the deterministic stand-in.
    tok = embed_table[text].astype(jnp.bfloat16)            # (b, seq, Tw)
    b, seq, tw = tok.shape
    e = text_projection.shape[1]
    e_pad = _round_up(e, _LANE)
    mask = mask.astype(jnp.float32)
    vmem_limit, _, tok_budget = _budgets()

    # Full-batch M tile for the MXU unless the token block would blow the
    # per-generation VMEM budget; then the largest multiple-of-8 tile that
    # fits (ragged last block is fine: rows are independent, OOB writes drop).
    blk_bytes = seq * tw * 2
    tb = b
    if tb * blk_bytes > tok_budget and b > _SUBLANE:
        tb = max(_SUBLANE, (tok_budget // blk_bytes) // _SUBLANE * _SUBLANE)
        tb = min(tb, b)
    nbt = pl.cdiv(b, tb)

    w_enc = w_txt_enc.astype(jnp.float32)
    w_proj = _pad_cols(text_projection, e_pad).astype(jnp.float32)

    out = pl.pallas_call(
        _text_kernel,
        out_shape=jax.ShapeDtypeStruct((b, e_pad), jnp.float32),
        grid=(nbt,),
        in_specs=[
            pl.BlockSpec((tb, seq, tw), lambda i: (i, 0, 0)),
            pl.BlockSpec((tb, seq), lambda i: (i, 0)),
            # Resident weights: constant index_map + single buffer (saves VMEM
            # headroom, matters on v7x at realistic widths).
            pl.BlockSpec((tw, tw), lambda i: (0, 0),
                         pipeline_mode=pl.Buffered(1)),
            pl.BlockSpec((tw, e_pad), lambda i: (0, 0),
                         pipeline_mode=pl.Buffered(1)),
        ],
        out_specs=pl.BlockSpec((tb, e_pad), lambda i: (i, 0)),
        compiler_params=pltpu.CompilerParams(
            dimension_semantics=("parallel",),
            vmem_limit_bytes=vmem_limit,
        ),
    )(tok, mask, w_enc, w_proj)
    return out[:, :e]


@functools.partial(jax.jit, static_argnames=("s_tile",))
def ego_video_forward(image, text, mask, params, s_tile=None):
    image_embed = encode_image(image, params["w_vis_enc"],
                               params["image_projection"], s_tile=s_tile)
    text_embed = encode_text(text, mask, params["embed_table"],
                             params["w_txt_enc"], params["text_projection"])
    return image_embed, text_embed


# ----------------------------------------------------------------------------
# Deterministic parameter init (mirrors trunc_normal_(std=width**-0.5))
# ----------------------------------------------------------------------------
def init_params(key, *, c, vision_width, text_width, embed_dim, vocab):
    k1, k2, k3, k4, k5 = jax.random.split(key, 5)
    trunc = lambda k, shape, std: (
        jax.random.truncated_normal(k, -2.0, 2.0, shape, jnp.float32) * std)
    return {
        # module parameters
        "image_projection": trunc(k1, (vision_width, embed_dim),
                                  vision_width ** -0.5),
        "text_projection": trunc(k2, (text_width, embed_dim),
                                 text_width ** -0.5),
        # stand-in backbone parameters
        "w_vis_enc": trunc(k3, (c, vision_width), c ** -0.5),
        "w_txt_enc": trunc(k4, (text_width, text_width), text_width ** -0.5),
        "embed_table": trunc(k5, (vocab, text_width), text_width ** -0.5),
    }


# ----------------------------------------------------------------------------
# Pure-JAX reference (f32) for correctness checking
# ----------------------------------------------------------------------------
def _reference_forward(image, text, mask, params):
    b, c, t, h, w = image.shape
    s = t * h * w
    img = image.reshape(b, c, s).astype(jnp.float32)
    pooled = img.mean(axis=-1)
    feat = pooled @ params["w_vis_enc"]
    emb = feat @ params["image_projection"]
    img_emb = emb / jnp.maximum(
        jnp.linalg.norm(emb, axis=-1, keepdims=True), EPS)

    tok = params["embed_table"][jnp.squeeze(text, axis=1)].astype(jnp.float32)
    m = mask.astype(jnp.float32)
    msum = jnp.maximum(m.sum(-1, keepdims=True), 1.0)
    tpooled = (tok * m[..., None]).sum(axis=1) / msum
    cls = jnp.tanh(tpooled @ params["w_txt_enc"])
    x = cls @ params["text_projection"]
    txt_emb = x / jnp.maximum(jnp.linalg.norm(x, axis=-1, keepdims=True), EPS)
    return img_emb, txt_emb


if __name__ == "__main__":
    key = jax.random.PRNGKey(0)

    # small shapes consistent with the forward signature
    b, c, t, h, w = 2, 4, 4, 16, 16          # S = t*h*w = 1024
    seq, vocab = 8, 32
    vision_width, text_width, embed_dim = 32, 32, 16

    kp, ki, kt, km = jax.random.split(key, 4)
    params = init_params(kp, c=c, vision_width=vision_width,
                         text_width=text_width, embed_dim=embed_dim,
                         vocab=vocab)

    image = jax.random.normal(ki, (b, c, t, h, w), jnp.float32)
    text = jax.random.randint(kt, (b, 1, seq), 0, vocab, jnp.int32)
    mask = (jax.random.uniform(km, (b, seq)) > 0.2).astype(jnp.float32)

    # default tiling (single full-width S tile at this size)
    img_emb, txt_emb = ego_video_forward(image, text, mask, params)
    # forced small S tile: exercises multi-tile accumulation, the 2-way
    # "parallel" S split, index clamping and the ragged-tail mask path
    img_emb2, txt_emb2 = ego_video_forward(image, text, mask, params,
                                           s_tile=384)
    jax.block_until_ready((img_emb, txt_emb, img_emb2, txt_emb2))

    assert img_emb.shape == (b, embed_dim)
    assert txt_emb.shape == (b, embed_dim)
    # embeddings are L2-normalized (normalization done in f32)
    assert bool(jnp.allclose(jnp.linalg.norm(img_emb, axis=-1), 1.0, atol=1e-5))
    assert bool(jnp.allclose(jnp.linalg.norm(txt_emb, axis=-1), 1.0, atol=1e-5))

    # tiling-invariance of the spatial reduction
    assert bool(jnp.allclose(img_emb, img_emb2, atol=1e-4))
    assert bool(jnp.allclose(txt_emb, txt_emb2, atol=1e-4))

    # compare against the f32 pure-JAX reference
    ref_img, ref_txt = _reference_forward(image, text, mask, params)
    assert bool(jnp.allclose(img_emb, ref_img, atol=2e-2))
    assert bool(jnp.allclose(txt_emb, ref_txt, atol=2e-2))
    assert bool(jnp.allclose(img_emb2, ref_img, atol=2e-2))
    assert bool(jnp.allclose(txt_emb2, ref_txt, atol=2e-2))

    print("KERNEL_OK")
</pallas_src>

<mosaic_0001>
module attributes {stable_mosaic.version = 11 : i64} {
  func.func @_spatial_sum_kernel(%arg0: i32, %arg1: i32, %arg2: memref<8x1024xf32, #tpu.memory_space<vmem>>, %arg3: memref<1x8x1xf32, #tpu.memory_space<vmem>>) attributes {dimension_semantics = [#tpu.dimension_semantics<parallel>, #tpu.dimension_semantics<arbitrary>], iteration_bounds = array<i64: 1, 1>, scalar_prefetch = 0 : i64, scratch_operands = 0 : i64, tpu.core_type = #tpu.core_type<tc>, window_params = [{transform_indices = @transform_0, window_bounds = array<i64: 8, 1024>}, {transform_indices = @transform_1, window_bounds = array<i64: 1, 8, 1>}]} {
    %c0_i32 = arith.constant 0 : i32
    %0 = arith.cmpi eq, %arg1, %c0_i32 : i32
    %1 = arith.extui %0 : i1 to i32
    %c0_i32_0 = arith.constant 0 : i32
    %2 = arith.cmpi ne, %1, %c0_i32_0 : i32
    scf.if %2 {
      %cst_8 = arith.constant 0.000000e+00 : f32
      %12 = vector.broadcast %cst_8 : f32 to vector<8x1xf32>
      %c0_9 = arith.constant 0 : index
      %c0_10 = arith.constant 0 : index
      %c0_11 = arith.constant 0 : index
      %13 = vector.load %arg3[%c0_9, %c0_10, %c0_11] : memref<1x8x1xf32, #tpu.memory_space<vmem>>, vector<1x8x1xf32>
      %14 = vector.shape_cast %13 : vector<1x8x1xf32> to vector<8x1xf32>
      %15 = vector.shape_cast %12 : vector<8x1xf32> to vector<1x8x1xf32>
      tpu.vector_store %arg3[%c0_9, %c0_10, %c0_11], %15 {strides = array<i32>} : memref<1x8x1xf32, #tpu.memory_space<vmem>>, vector<1x8x1xf32>,
    } else {
    }
    %c0 = arith.constant 0 : index
    %c0_1 = arith.constant 0 : index
    %3 = vector.load %arg2[%c0, %c0_1] : memref<8x1024xf32, #tpu.memory_space<vmem>>, vector<8x1024xf32>
    %c0_2 = arith.constant 0 : index
    %c0_3 = arith.constant 0 : index
    %c0_4 = arith.constant 0 : index
    %4 = vector.load %arg3[%c0_2, %c0_3, %c0_4] : memref<1x8x1xf32, #tpu.memory_space<vmem>>, vector<1x8x1xf32>
    %5 = vector.shape_cast %4 : vector<1x8x1xf32> to vector<8x1xf32>
    %cst = arith.constant dense<0.000000e+00> : vector<8xf32>
    %6 = vector.multi_reduction <add>, %3, %cst [1] : vector<8x1024xf32> to vector<8xf32>
    %7 = vector.shape_cast %6 : vector<8xf32> to vector<8x1xf32>
    %8 = arith.addf %5, %7 : vector<8x1xf32>
    %c0_5 = arith.constant 0 : index
    %c0_6 = arith.constant 0 : index
    %c0_7 = arith.constant 0 : index
    %9 = vector.load %arg3[%c0_5, %c0_6, %c0_7] : memref<1x8x1xf32, #tpu.memory_space<vmem>>, vector<1x8x1xf32>
    %10 = vector.shape_cast %9 : vector<1x8x1xf32> to vector<8x1xf32>
    %11 = vector.shape_cast %8 : vector<8x1xf32> to vector<1x8x1xf32>
    tpu.vector_store %arg3[%c0_5, %c0_6, %c0_7], %11 {strides = array<i32>} : memref<1x8x1xf32, #tpu.memory_space<vmem>>, vector<1x8x1xf32>,
    return
  }
  func.func @transform_0(%arg0: i32, %arg1: i32) -> (i32, i32) {
    %c1_i32 = arith.constant 1 : i32
    %0 = arith.muli %arg0, %c1_i32 : i32
    %1 = arith.addi %0, %arg1 : i32
    %c0_i32 = arith.constant 0 : i32
    %2 = arith.minsi %1, %c0_i32 : i32
    %c0_i32_0 = arith.constant 0 : i32
    %c0_i32_1 = arith.constant 0 : i32
    return %c0_i32_0, %2 : i32, i32
  }
  func.func @transform_1(%arg0: i32, %arg1: i32) -> (i32, i32, i32) {
    %c0_i32 = arith.constant 0 : i32
    %c0_i32_0 = arith.constant 0 : i32
    %c0_i32_1 = arith.constant 0 : i32
    return %arg0, %c0_i32, %c0_i32_0 : i32, i32, i32
  }
}

module attributes {stable_mosaic.version = 11 : i64} {
  func.func @_vision_head_kernel(%arg0: memref<2x4xf32, #tpu.memory_space<vmem>>, %arg1: memref<4x32xf32, #tpu.memory_space<vmem>>, %arg2: memref<32x128xf32, #tpu.memory_space<vmem>>, %arg3: memref<2x128xf32, #tpu.memory_space<vmem>>) attributes {dimension_semantics = [], scalar_prefetch = 0 : i64, scratch_operands = 0 : i64, tpu.core_type = #tpu.core_type<tc>} {
    %c0 = arith.constant 0 : index
    %c0_0 = arith.constant 0 : index
    %0 = vector.load %arg0[%c0, %c0_0] : memref<2x4xf32, #tpu.memory_space<vmem>>, vector<2x4xf32>
    %c0_1 = arith.constant 0 : index
    %c0_2 = arith.constant 0 : index
    %1 = vector.load %arg1[%c0_1, %c0_2] : memref<4x32xf32, #tpu.memory_space<vmem>>, vector<4x32xf32>
    %cst = arith.constant dense<0.000000e+00> : vector<2x32xf32>
    %2 = tpu.matmul %0, %1, %cst {dimension_numbers = #tpu.dot_dimension_numbers<[1], [0], [0], [1], [0, 0, 1, 1], [], []>} : vector<2x4xf32>, vector<4x32xf32>, vector<2x32xf32> -> vector<2x32xf32>
    %c0_3 = arith.constant 0 : index
    %c0_4 = arith.constant 0 : index
    %3 = vector.load %arg2[%c0_3, %c0_4] : memref<32x128xf32, #tpu.memory_space<vmem>>, vector<32x128xf32>
    %cst_5 = arith.constant dense<0.000000e+00> : vector<2x128xf32>
    %4 = tpu.matmul %2, %3, %cst_5 {dimension_numbers = #tpu.dot_dimension_numbers<[1], [0], [0], [1], [0, 0, 1, 1], [], []>} : vector<2x32xf32>, vector<32x128xf32>, vector<2x128xf32> -> vector<2x128xf32>
    %5 = arith.mulf %4, %4 : vector<2x128xf32>
    %cst_6 = arith.constant dense<0.000000e+00> : vector<2xf32>
    %6 = vector.multi_reduction <add>, %5, %cst_6 [1] : vector<2x128xf32> to vector<2xf32>
    %7 = vector.shape_cast %6 : vector<2xf32> to vector<2x1xf32>
    %cst_7 = arith.constant 1.000000e-24 : f32
    %8 = vector.broadcast %cst_7 : f32 to vector<2x1xf32>
    %9 = arith.maximumf %7, %8 : vector<2x1xf32>
    %10 = math.rsqrt %9 : vector<2x1xf32>
    %11 = vector.broadcast %10 : vector<2x1xf32> to vector<2x128xf32>
    %12 = arith.mulf %4, %11 : vector<2x128xf32>
    %c0_8 = arith.constant 0 : index
    %c0_9 = arith.constant 0 : index
    %13 = vector.load %arg3[%c0_8, %c0_9] : memref<2x128xf32, #tpu.memory_space<vmem>>, vector<2x128xf32>
    tpu.vector_store %arg3[%c0_8, %c0_9], %12 {strides = array<i32>} : memref<2x128xf32, #tpu.memory_space<vmem>>, vector<2x128xf32>,
    return
  }
}

module attributes {stable_mosaic.version = 11 : i64} {
  func.func @_text_kernel(%arg0: i32, %arg1: memref<2x8x32xbf16, #tpu.memory_space<vmem>>, %arg2: memref<2x8xf32, #tpu.memory_space<vmem>>, %arg3: memref<32x32xf32, #tpu.memory_space<vmem>>, %arg4: memref<32x128xf32, #tpu.memory_space<vmem>>, %arg5: memref<2x128xf32, #tpu.memory_space<vmem>>) attributes {dimension_semantics = [#tpu.dimension_semantics<parallel>], iteration_bounds = array<i64: 1>, scalar_prefetch = 0 : i64, scratch_operands = 0 : i64, tpu.core_type = #tpu.core_type<tc>, window_params = [{transform_indices = @transform_0, window_bounds = array<i64: 2, 8, 32>}, {transform_indices = @transform_1, window_bounds = array<i64: 2, 8>}, {pipeline_mode = #tpu.pipeline_mode<synchronous>, transform_indices = @transform_2, window_bounds = array<i64: 32, 32>}, {pipeline_mode = #tpu.pipeline_mode<synchronous>, transform_indices = @transform_3, window_bounds = array<i64: 32, 128>}, {transform_indices = @transform_4, window_bounds = array<i64: 2, 128>}]} {
    %c0 = arith.constant 0 : index
    %c0_0 = arith.constant 0 : index
    %0 = vector.load %arg2[%c0, %c0_0] : memref<2x8xf32, #tpu.memory_space<vmem>>, vector<2x8xf32>
    %cst = arith.constant dense<0.000000e+00> : vector<2xf32>
    %1 = vector.multi_reduction <add>, %0, %cst [1] : vector<2x8xf32> to vector<2xf32>
    %2 = vector.shape_cast %1 : vector<2xf32> to vector<2x1xf32>
    %cst_1 = arith.constant 1.000000e+00 : f32
    %3 = vector.broadcast %cst_1 : f32 to vector<2x1xf32>
    %4 = arith.maximumf %2, %3 : vector<2x1xf32>
    %5 = vector.broadcast %4 : vector<2x1xf32> to vector<2x8xf32>
    %6 = arith.divf %0, %5 : vector<2x8xf32>
    %c0_2 = arith.constant 0 : index
    %c0_3 = arith.constant 0 : index
    %c0_4 = arith.constant 0 : index
    %7 = vector.load %arg1[%c0_2, %c0_3, %c0_4] : memref<2x8x32xbf16, #tpu.memory_space<vmem>>, vector<2x8x32xbf16>
    %8 = arith.extf %7 : vector<2x8x32xbf16> to vector<2x8x32xf32>
    %9 = vector.shape_cast %6 : vector<2x8xf32> to vector<2x8x1xf32>
    %10 = vector.broadcast %9 : vector<2x8x1xf32> to vector<2x8x32xf32>
    %11 = arith.mulf %8, %10 : vector<2x8x32xf32>
    %cst_5 = arith.constant dense<0.000000e+00> : vector<2x32xf32>
    %12 = vector.multi_reduction <add>, %11, %cst_5 [1] : vector<2x8x32xf32> to vector<2x32xf32>
    %c0_6 = arith.constant 0 : index
    %c0_7 = arith.constant 0 : index
    %13 = vector.load %arg3[%c0_6, %c0_7] : memref<32x32xf32, #tpu.memory_space<vmem>>, vector<32x32xf32>
    %cst_8 = arith.constant dense<0.000000e+00> : vector<2x32xf32>
    %14 = tpu.matmul %12, %13, %cst_8 {dimension_numbers = #tpu.dot_dimension_numbers<[1], [0], [0], [1], [0, 0, 1, 1], [], []>} : vector<2x32xf32>, vector<32x32xf32>, vector<2x32xf32> -> vector<2x32xf32>
    %15 = math.tanh %14 : vector<2x32xf32>
    %c0_9 = arith.constant 0 : index
    %c0_10 = arith.constant 0 : index
    %16 = vector.load %arg4[%c0_9, %c0_10] : memref<32x128xf32, #tpu.memory_space<vmem>>, vector<32x128xf32>
    %cst_11 = arith.constant dense<0.000000e+00> : vector<2x128xf32>
    %17 = tpu.matmul %15, %16, %cst_11 {dimension_numbers = #tpu.dot_dimension_numbers<[1], [0], [0], [1], [0, 0, 1, 1], [], []>} : vector<2x32xf32>, vector<32x128xf32>, vector<2x128xf32> -> vector<2x128xf32>
    %18 = arith.mulf %17, %17 : vector<2x128xf32>
    %cst_12 = arith.constant dense<0.000000e+00> : vector<2xf32>
    %19 = vector.multi_reduction <add>, %18, %cst_12 [1] : vector<2x128xf32> to vector<2xf32>
    %20 = vector.shape_cast %19 : vector<2xf32> to vector<2x1xf32>
    %cst_13 = arith.constant 1.000000e-24 : f32
    %21 = vector.broadcast %cst_13 : f32 to vector<2x1xf32>
    %22 = arith.maximumf %20, %21 : vector<2x1xf32>
    %23 = math.rsqrt %22 : vector<2x1xf32>
    %24 = vector.broadcast %23 : vector<2x1xf32> to vector<2x128xf32>
    %25 = arith.mulf %17, %24 : vector<2x128xf32>
    %c0_14 = arith.constant 0 : index
    %c0_15 = arith.constant 0 : index
    %26 = vector.load %arg5[%c0_14, %c0_15] : memref<2x128xf32, #tpu.memory_space<vmem>>, vector<2x128xf32>
    tpu.vector_store %arg5[%c0_14, %c0_15], %25 {strides = array<i32>} : memref<2x128xf32, #tpu.memory_space<vmem>>, vector<2x128xf32>,
    return
  }
  func.func @transform_0(%arg0: i32) -> (i32, i32, i32) {
    %c0_i32 = arith.constant 0 : i32
    %c0_i32_0 = arith.constant 0 : i32
    %c0_i32_1 = arith.constant 0 : i32
    return %arg0, %c0_i32, %c0_i32_0 : i32, i32, i32
  }
  func.func @transform_1(%arg0: i32) -> (i32, i32) {
    %c0_i32 = arith.constant 0 : i32
    %c0_i32_0 = arith.constant 0 : i32
    return %arg0, %c0_i32 : i32, i32
  }
  func.func @transform_2(%arg0: i32) -> (i32, i32) {
    %c0_i32 = arith.constant 0 : i32
    %c0_i32_0 = arith.constant 0 : i32
    %c0_i32_1 = arith.constant 0 : i32
    return %c0_i32, %c0_i32_0 : i32, i32
  }
  func.func @transform_3(%arg0: i32) -> (i32, i32) {
    %c0_i32 = arith.constant 0 : i32
    %c0_i32_0 = arith.constant 0 : i32
    %c0_i32_1 = arith.constant 0 : i32
    return %c0_i32, %c0_i32_0 : i32, i32
  }
  func.func @transform_4(%arg0: i32) -> (i32, i32) {
    %c0_i32 = arith.constant 0 : i32
    %c0_i32_0 = arith.constant 0 : i32
    return %arg0, %c0_i32 : i32, i32
  }
}

</mosaic_0001>

<bundles_post_ra>
// kernel: ego_video_forward.3
= control target key start
LH: loop header
LB: loop body
LE: loop exit
PB: predicated region body
PF: predicated region fallthrough
CT: control target
= control target key end

     0   :  { %vm44_vm0 = vcmask 7168   ;;  %v78_v3 = vmov 0.0   ;;  %s124_s0 = inlined_call_operand.vmem [shape: f32[8,1024], index: 0, kind: input, shape index: {}]   ;;  %s125_s1 = inlined_call_operand.vmem [shape: f32[1,8,1], index: 1, kind: output, shape index: {}]  }
   0x1   :  { %v46_v0 = vld [vmem:[%s124_s0] sm:$0xff]  ;;  %v47_v1 = vld [vmem:[%s124_s0 + $0x8] sm:$0xff]  ;;  %v48_v2 = vld [vmem:[%s124_s0 + $0x10] sm:$0xff]  ;;  %45 = vst.msk [vmem:[%s125_s1] sm:$0xff] %vm44_vm0, %v78_v3 }
   0x2   :  { %v55_v4 = vadd.f32 %v47_v1, %v46_v0  ;;  %v49_v5 = vld [vmem:[%s124_s0 + $0x18] sm:$0xff]  ;;  %v50_v7 = vld [vmem:[%s124_s0 + $0x20] sm:$0xff]  ;;  %v51_v9 = vld [vmem:[%s124_s0 + $0x28] sm:$0xff] }
   0x3   :  { %v52_v11 = vld [vmem:[%s124_s0 + $0x30] sm:$0xff]  ;;  %v53_v13 = vld [vmem:[%s124_s0 + $0x38] sm:$0xff] }
   0x4   :  { %v56_v6 = vadd.f32 %v55_v4, %v48_v2 }
   0x6   :  { %v57_v8 = vadd.f32 %v56_v6, %v49_v5 }
   0x8   :  { %v58_v10 = vadd.f32 %v57_v8, %v50_v7  ;;  %v54_v16 = vld [vmem:[%s125_s1] sm:$0xff] }
   0xa   :  { %v59_v12 = vadd.f32 %v58_v10, %v51_v9 }
   0xc   :  { %v60_v14 = vadd.f32 %v59_v12, %v52_v11 }
   0xe   :  { %v61_v15 = vadd.f32 %v60_v14, %v53_v13 }
  0x10   :  { %62 = vadd.xlane.f32.xlu0 %v61_v15 }
  0x9d   :  { %v63_v17 = vpop.xlane.xlu0 %62 }
  0x9e   :  { %v64_v18 = vadd.f32 %v63_v17, %v54_v16 }
  0xa0   :  { %66 = vst.msk [vmem:[%s125_s1] sm:$0xff] %vm44_vm0, %v64_v18 }

// kernel: ego_video_forward.4
= control target key start
LH: loop header
LB: loop body
LE: loop exit
PB: predicated region body
PF: predicated region fallthrough
CT: control target
= control target key end

     0   :  { %vm21_vm0 = vcmask 1043456   ;;  %vm17_vm1 = vcmask 31744   ;;  %v258_v1 = vmov 0.0   ;;  %vm259_vm2 = vmmov 0   ;;  %s312_s0 = inlined_call_operand.vmem [shape: f32[2,4], index: 0, kind: input, shape index: {}]   ;;  %s313_s1 = inlined_call_operand.vmem [shape: f32[4,32], index: 1, kind: input, shape index: {}]   ;;  %s314_s2 = inlined_call_operand.vmem [shape: f32[32,128], index: 2, kind: input, shape index: {}]   ;;  %s315_s3 = inlined_call_operand.hbm [shape: f32[2,128], index: 3, kind: output, shape index: {}]  }
   0x1   :  { %v16_v0 = vld [vmem:[%s313_s1] sm:$0xf]  ;;  %206 = vmatprep.subr.mxu0 %v258_v1  ;;  %208 = vmatprep.mubr.msk.f32.mxu0 %vm259_vm2, %v258_v1  ;;  %v96_v4 = vld [vmem:[%s314_s2 + $0x8] sm:$0xff]  ;;  %v260_v5 = vmov 0.0|0.0   ;;  %v97_v7 = vld [vmem:[%s314_s2 + $0x10] sm:$0xff] }
   0x2   :  { %v15_v2 = vld [vmem:[%s312_s0] sm:$0x3]  ;;  %207 = vmatpush3.msk.msra.mxu0 %vm21_vm0, %v16_v0  ;;  %222 = vmatprep.subr.bf16.mxu1 %v260_v5  ;;  %v98_v8 = vld [vmem:[%s314_s2 + $0x18] sm:$0xff] }
   0x3   :  { %v95_v3 = vld [vmem:[%s314_s2] sm:$0xff] }
   0x4   :  { %v223_v6 = vpack.c.bf16 %v96_v4, %v95_v3 }
   0x5   :  { %8 = vsyncpa [#allocation3], 0  ;;  %209 = vmatmul.mubr.msk.f32.vlgmr.msra.gmra.mrb[0].mxu0 %vm17_vm1, %v15_v2  ;;  %219 = vmatprep.mubr.msk.f32.mxu1 %vm259_vm2, %v258_v1  ;;  %v226_v9 = vpack.c.bf16 %v98_v8, %v97_v7  ;;  %vm99_vm3 = vcmask 261120   ;;  %vm174_vm4 = vcmask 1041408   ;;  %s261_s0 = smov [#allocation2]  }
   0x6   :  { %224 = vmatpush3.bf16.msra.mxu1 %v223_v6  ;;  %s188_s2 = sshll.u32 %s261_s0, 4  ;;  %s189_s2 = int_to_ptr.vmem [resolvable:$true] %s188_s2 }
   0x7   :  { %225 = vmatprep.subr.bf16.mxu1 %v260_v5  ;;  %s234_s23 = scalar_lea.vmem %s189_s2, 32  ;;  %p239_p1 = scmp.lt.s32.totalorder %s189_s2, %s189_s2 }
   0x8   :  { %p235_p0 = scmp.ne.s32.totalorder %s189_s2, %s234_s23  ;;  %p240_p2 = scmp.lt.s32.totalorder %s234_s23, %s234_s23 }
   0xa   :  { %227 = vmatpush3.bf16.msra.mxu1 %v226_v9  ;;  %p241_p3 = por %p240_p2, %p239_p1 }
   0xc   :  { %p242_p4 = pnand %p241_p3, %p235_p0 }
  0xd8   :  { %v91_v10 = vpop.f32.mrb[0].mxu0 }
  0xd9   :  { %v210_v11 = vpop.f32.mrb[1].mxu0  ;;  %220 = vmatmul.mubr.msk.f32.vlgmr.msra.gmra.mrb[0].mxu1 %vm99_vm3, %v91_v10 }
 0x1ac   :  { %v169_v12 = vpop.f32.mrb[0].mxu1 }
 0x1ad   :  { %v221_v13 = vpop.f32.mrb[1].mxu1  ;;  %v173_v14 = vmul.f32 %v169_v12, %v169_v12 }
 0x1af   :  { %v175_v15 = vsel %vm174_vm4, %v173_v14, 0.0 }
 0x1b0   :  { %176 = vadd.xlane.f32.xlu0 %v175_v15 }
 0x23d   :  { %v177_v16 = vpop.xlane.xlu0 %176 }
 0x23e   :  { %v178_v17 = vmax.f32 %v177_v16, 1e-24 }
 0x240   :  { %232 = vrsqrt.f32 %v178_v17 }
 0x24a   :  { %v233_v18 = vpop.eup %232 }
 0x24b   :  { %v180_v19 = vmul.f32 %v233_v18, %v169_v12 }
 0x24d   :  { %181 = vst [vmem:[#allocation2] sm:$0x3] %v180_v19 }
 0x24e   :  { %245 = shalt.err (!%p242_p4)
}
 0x24f   :  { %s246_s26 = scalar_lea.hbm %s315_s3, 32 }
 0x250   :  { %p247_p5 = scmp.ne.s32.totalorder %s315_s3, %s246_s26  ;;  %p250_p6 = scmp.lt.u32.totalorder %s246_s26, %s315_s3 }
 0x252   :  { %p252_p7 = pnand %p250_p6, %p247_p5 }
 0x254   :  { %255 = shalt.err (!%p252_p7)
}
 0x255   :  { %191 = dma.vmem_to_hbm [thread:$0]  %s189_s2, 32, %s315_s3, [#allocation3]  }
 0x256   :  { %256 = dma.done.wait [#allocation3], 32  }
 0x257   :  { %257 = vsyncadd [#allocation3], 4294967264 }
 0x258   :  { %195 = vsyncpa [#allocation3], 1 }

// kernel: ego_video_forward.5
= control target key start
LH: loop header
LB: loop body
LE: loop exit
PB: predicated region body
PF: predicated region fallthrough
CT: control target
= control target key end

     0   :  { %vm19_vm0 = vcmask 58368   ;;  %s401_s0 = inlined_call_operand.vmem [shape: bf16[2,8,32], index: 0, kind: input, shape index: {}]   ;;  %s402_s1 = inlined_call_operand.vmem [shape: f32[2,8], index: 1, kind: input, shape index: {}]   ;;  %s403_s2 = inlined_call_operand.vmem [shape: f32[32,32], index: 2, kind: input, shape index: {}]   ;;  %s404_s3 = inlined_call_operand.vmem [shape: f32[32,128], index: 3, kind: input, shape index: {}]   ;;  %s405_s4 = inlined_call_operand.hbm [shape: f32[2,128], index: 4, kind: output, shape index: {}]  }
   0x1   :  { %v18_v0 = vld [vmem:[%s402_s1] sm:$0x3] }
   0x2   :  { %9 = vsyncpa [#allocation3], 0  ;;  %v20_v1 = vsel %vm19_vm0, %v18_v0, 0.0  ;;  %v30_v4 = vlaneseq  ;;  %v61_v6 = vld [vmem:[%s403_s2] sm:$0xff]  ;;  %v62_v7 = vld [vmem:[%s403_s2 + $0x8] sm:$0xff]  ;;  %v326_v12 = vmov 0.0|0.0  }
   0x3   :  { %21 = vadd.xlane.f32.xlu0 %v20_v1  ;;  %v281_v10 = vpack.c.bf16 %v62_v7, %v61_v6  ;;  %280 = vmatprep.subr.bf16.mxu0 %v326_v12  ;;  %v63_v14 = vld [vmem:[%s403_s2 + $0x10] sm:$0xff]  ;;  %v64_v15 = vld [vmem:[%s403_s2 + $0x18] sm:$0xff]  ;;  %vm327_vm1 = vmmov 0   ;;  %v328_v19 = vmov 0.0   ;;  %v245_v20 = vld [vmem:[%s401_s0] sm:$0xff]   ;;  %vm46_vm2 = vcmask 261120  }
   0x4   :  { %v31_v5 = vshrl.u32 %v30_v4, 7  ;;  %286 = vmatprep.subr.bf16.mxu1 %v326_v12  ;;  %v284_v18 = vpack.c.bf16 %v64_v15, %v63_v14  ;;  %266 = vmatprep.mubr.msk.f32.mxu0 %vm327_vm1, %v328_v19  ;;  %v247_v21 = vunpack.c.h.bf16 %v245_v20  ;;  %v246_v22 = vunpack.c.l.bf16 %v245_v20  ;;  %v142_v42 = vld [vmem:[%s404_s3] sm:$0xff]  ;;  %v143_v43 = vld [vmem:[%s404_s3 + $0x8] sm:$0xff]  ;;  %v144_v44 = vld [vmem:[%s404_s3 + $0x10] sm:$0xff] }
   0x5   :  { %282 = vmatpush3.bf16.msra.mxu0 %v281_v10  ;;  %277 = vmatprep.mubr.msk.f32.mxu1 %vm327_vm1, %v328_v19  ;;  %vm67_vm3 = vcmask 1041409   ;;  %v287_v45 = vpack.c.bf16 %v143_v43, %v142_v42  ;;  %v145_v46 = vld [vmem:[%s404_s3 + $0x18] sm:$0xff]  ;;  %vm220_vm4 = vcmask 1041408   ;;  %s329_s3 = smov [#allocation2]  }
   0x6   :  { %v39_v8 = vsub.s32 1, %v31_v5  ;;  %v32_v9 = vsub.s32 0, %v31_v5  ;;  %283 = vmatprep.subr.bf16.mxu0 %v326_v12  ;;  %v290_v47 = vpack.c.bf16 %v145_v46, %v144_v44  ;;  %s234_s6 = sshll.u32 %s329_s3, 4  ;;  %s235_s6 = int_to_ptr.vmem [resolvable:$true] %s234_s6 }
   0x7   :  { %288 = vmatpush3.bf16.msra.mxu1 %v287_v45  ;;  %s302_s7 = scalar_lea.vmem %s235_s6, 32  ;;  %p307_p1 = scmp.lt.s32.totalorder %s235_s6, %s235_s6 }
   0x8   :  { %289 = vmatprep.subr.bf16.mxu1 %v326_v12  ;;  %p303_p0 = scmp.ne.s32.totalorder %s235_s6, %s302_s7  ;;  %p308_p2 = scmp.lt.s32.totalorder %s302_s7, %s302_s7 }
   0x9   :  { %285 = vmatpush3.bf16.msra.mxu0 %v284_v18 }
   0xa   :  { %p309_p3 = por %p308_p2, %p307_p1 }
   0xb   :  { %291 = vmatpush3.bf16.msra.mxu1 %v290_v47 }
   0xc   :  { %p310_p4 = pnand %p309_p3, %p303_p0 }
  0x90   :  { %v22_v2 = vpop.xlane.xlu0 %21 }
  0x91   :  { %v23_v3 = vmax.f32 %v22_v2, 1.0 }
  0x93   :  { %296 = vrcp.f32 %v23_v3 }
  0x9d   :  { %v297_v11 = vpop.eup %296 }
  0x9e   :  { %v25_v13 = vmul.f32 %v297_v11, %v18_v0 }
  0xa0   :  { %v40_v16 = vrot.slane %v25_v13, %v39_v8  ;;  %v33_v17 = vrot.slane %v25_v13, %v32_v9 }
  0xa2   :  { %42 = vbcast.lane.b32.xlu1 %v40_v16, 256  ;;  %35 = vbcast.lane.b32.xlu0 %v33_v17, 256 }
 0x114   :  { %v43_v23 = vpop.permute.xlu1 %42  ;;  %v36_v24 = vpop.permute.xlu0 %35 }
 0x115   :  { %v45_v25 = vmul.f32 %v247_v21, %v43_v23  ;;  %v44_v26 = vmul.f32 %v246_v22, %v36_v24 }
 0x117   :  { %v54_v27 = vsel %vm46_vm2, %v45_v25, 0.0  ;;  %v47_v28 = vsel %vm46_vm2, %v44_v26, 0.0 }
 0x118   :  { %v55_v29 = vrot.slane %v54_v27, 4  ;;  %v48_v30 = vrot.slane %v47_v28, 4 }
 0x11a   :  { %v56_v31 = vadd.f32 %v55_v29, %v54_v27  ;;  %v49_v32 = vadd.f32 %v48_v30, %v47_v28 }
 0x11c   :  { %v57_v33 = vrot.slane %v56_v31, 2  ;;  %v50_v34 = vrot.slane %v49_v32, 2 }
 0x11e   :  { %v58_v35 = vadd.f32 %v57_v33, %v56_v31  ;;  %v51_v36 = vadd.f32 %v50_v34, %v49_v32 }
 0x120   :  { %v59_v37 = vrot.slane %v58_v35, 1  ;;  %v52_v38 = vrot.slane %v51_v36, 1 }
 0x122   :  { %v60_v39 = vadd.f32 %v59_v37, %v58_v35  ;;  %v53_v40 = vadd.f32 %v52_v38, %v51_v36 }
 0x124   :  { %v68_v41 = vsel %vm67_vm3, %v60_v39, %v53_v40 }
 0x125   :  { %267 = vmatmul.mubr.msk.f32.vlgmr.msra.gmra.mrb[0].mxu0 %vm46_vm2, %v68_v41 }
 0x1f8   :  { %v137_v48 = vpop.f32.mrb[0].mxu0 }
 0x1f9   :  { %298 = vtanh.f32 %v137_v48  ;;  %v268_v49 = vpop.f32.mrb[1].mxu0 }
 0x203   :  { %v299_v50 = vpop.eup %298 }
 0x204   :  { %278 = vmatmul.mubr.msk.f32.vlgmr.msra.gmra.mrb[0].mxu1 %vm46_vm2, %v299_v50 }
 0x2d7   :  { %v215_v51 = vpop.f32.mrb[0].mxu1 }
 0x2d8   :  { %v219_v52 = vmul.f32 %v215_v51, %v215_v51  ;;  %v279_v53 = vpop.f32.mrb[1].mxu1 }
 0x2da   :  { %v221_v54 = vsel %vm220_vm4, %v219_v52, 0.0 }
 0x2db   :  { %222 = vadd.xlane.f32.xlu1 %v221_v54 }
 0x368   :  { %v223_v55 = vpop.xlane.xlu1 %222 }
 0x369   :  { %v224_v56 = vmax.f32 %v223_v55, 1e-24 }
 0x36b   :  { %300 = vrsqrt.f32 %v224_v56 }
 0x375   :  { %v301_v57 = vpop.eup %300 }
 0x376   :  { %v226_v58 = vmul.f32 %v301_v57, %v215_v51 }
 0x378   :  { %227 = vst [vmem:[#allocation2] sm:$0x3] %v226_v58 }
 0x379   :  { %313 = shalt.err (!%p310_p4)
}
 0x37a   :  { %s314_s10 = scalar_lea.hbm %s405_s4, 32 }
 0x37b   :  { %p315_p5 = scmp.ne.s32.totalorder %s405_s4, %s314_s10  ;;  %p318_p6 = scmp.lt.u32.totalorder %s314_s10, %s405_s4 }
 0x37d   :  { %p320_p7 = pnand %p318_p6, %p315_p5 }
 0x37f   :  { %323 = shalt.err (!%p320_p7)
}
 0x380   :  { %237 = dma.vmem_to_hbm [thread:$0]  %s235_s6, 32, %s405_s4, [#allocation3]  }
 0x381   :  { %324 = dma.done.wait [#allocation3], 32  }
 0x382   :  { %325 = vsyncadd [#allocation3], 4294967264 }
 0x383   :  { %241 = vsyncpa [#allocation3], 1 }

</bundles_post_ra>
